<compile_context>
chip_gen: v5e
topology: v5e:2x2
jax: 0.10.0
libtpu: 0.0.40
codegen_flags: <defaults>
</compile_context>

<pallas_src>
import jax
import jax.numpy as jnp
from jax.experimental import pallas as pl
from jax.experimental.pallas import tpu as pltpu


def _round_up(x, m):
    return (x + m - 1) // m * m


def _fused_actor_critic_kernel(x_ref, w1_ref, b1_ref, w2_ref, b2_ref, o_ref):
    """One batch tile of the fused actor+critic MLP.

    x  : [TILE_B, S]    bf16
    w1 : [S, 2H]        bf16  (actor hidden || critic hidden)
    b1 : [1, 2H]        f32
    w2 : [2H, OUT]      bf16  block-diagonal: actor -> cols 0..A-1, critic -> col A
    b2 : [1, OUT]       f32
    o  : [TILE_B, OUT]  f32
    """
    # Matmul 1 (bf16 x bf16 -> f32 accumulate), bias + ReLU epilogue in f32.
    h = jnp.dot(x_ref[...], w1_ref[...], preferred_element_type=jnp.float32)
    h = jnp.maximum(h + b1_ref[...], 0.0)
    # Matmul 2 on the native bf16 MXU path, f32 accumulate, f32 bias + store.
    out = jnp.dot(h.astype(w2_ref.dtype), w2_ref[...],
                  preferred_element_type=jnp.float32)
    o_ref[...] = out + b2_ref[...]


def prepare_actor_critic_params(actor_params, critic_params, lane_pad=8):
    """One-time layout prep (call ONCE, reuse every forward call).

    actor_params : w1 [H, S], b1 [H], w2 [A, H], b2 [A]   (PyTorch convention)
    critic_params: w1 [H, S], b1 [H], w2 [1, H], b2 [1]
    Returns fused, kernel-ready arrays (bf16 weights, f32 biases).
    """
    aw1, ab1 = actor_params["w1"], actor_params["b1"]
    aw2, ab2 = actor_params["w2"], actor_params["b2"]
    cw1, cb1 = critic_params["w1"], critic_params["b1"]
    cw2, cb2 = critic_params["w2"], critic_params["b2"]

    H, S = aw1.shape
    A = aw2.shape[0]
    assert cw1.shape == (H, S) and cw2.shape == (1, H)

    # Small sublane-aligned output width: actions in cols 0..A-1, value at A,
    # zeros beyond.  (Was 128 lanes before; 8 cuts output HBM writes ~16x.)
    OUT = _round_up(A + 1, lane_pad)

    # First layer: concatenate the two hidden projections (bf16 matmul input).
    w1 = jnp.concatenate([aw1.T, cw1.T], axis=1).astype(jnp.bfloat16)   # [S, 2H]
    b1 = jnp.concatenate([ab1, cb1]).reshape(1, 2 * H).astype(jnp.float32)

    # Second layer: exact block-diagonal so heads never cross-contaminate.
    w2 = jnp.zeros((2 * H, OUT), jnp.float32)
    w2 = w2.at[:H, :A].set(aw2.T.astype(jnp.float32))           # actor block
    w2 = w2.at[H:, A].set(cw2.reshape(-1).astype(jnp.float32))  # critic column
    w2 = w2.astype(jnp.bfloat16)
    b2 = jnp.zeros((1, OUT), jnp.float32)
    b2 = b2.at[0, :A].set(ab2.astype(jnp.float32))
    b2 = b2.at[0, A].set(cb2[0].astype(jnp.float32))

    return {"w1": w1, "b1": b1, "w2": w2, "b2": b2,
            "act_dim": int(A), "hidden": int(H)}


def actor_critic_forward(state, fused, *, max_tile_b=4096):
    """Fused forward pass: (action_pred [B, A], value_pred [B, 1])."""
    B, S = state.shape
    A = fused["act_dim"]
    w1, b1, w2, b2 = fused["w1"], fused["b1"], fused["w2"], fused["b2"]
    H2 = w1.shape[1]                # 2 * hidden
    OUT = w2.shape[1]
    assert w1.shape[0] == S

    # Batch tiling.  No wrapper-side jnp.pad: Pallas masks out-of-bounds rows
    # of a ragged last block on the store path, and garbage input rows never
    # mix across rows in the matmuls.
    if B <= 16:
        tile_b = B                                      # single full-extent block
    else:
        # >=2 grid steps so v7x megacore sharding has work for both TCs;
        # 16-row aligned for bf16 sublane packing; capped for VMEM headroom.
        tile_b = min(max_tile_b, _round_up(pl.cdiv(B, 2), 16))
    grid_b = pl.cdiv(B, tile_b)

    x = state.astype(jnp.bfloat16)

    out = pl.pallas_call(
        _fused_actor_critic_kernel,
        out_shape=jax.ShapeDtypeStruct((B, OUT), jnp.float32),
        grid=(grid_b,),
        in_specs=[
            pl.BlockSpec((tile_b, S), lambda i: (i, 0)),   # x: tiled over batch
            pl.BlockSpec((S, H2), lambda i: (0, 0)),       # w1: VMEM-resident
            pl.BlockSpec((1, H2), lambda i: (0, 0)),       # b1: VMEM-resident
            pl.BlockSpec((H2, OUT), lambda i: (0, 0)),     # w2: VMEM-resident
            pl.BlockSpec((1, OUT), lambda i: (0, 0)),      # b2: VMEM-resident
        ],
        out_specs=pl.BlockSpec((tile_b, OUT), lambda i: (i, 0)),
        compiler_params=pltpu.CompilerParams(
            dimension_semantics=("parallel",)),            # batch axis shardable
    )(x, w1, b1, w2, b2)

    action_pred = out[:, :A]
    value_pred = out[:, A:A + 1]
    return action_pred, value_pred


def _init_linear(key, out_dim, in_dim):
    """Deterministic PyTorch-style (uniform +/- 1/sqrt(in)) Linear init."""
    kw, kb = jax.random.split(key)
    bound = 1.0 / jnp.sqrt(jnp.float32(in_dim))
    w = jax.random.uniform(kw, (out_dim, in_dim), jnp.float32, -bound, bound)
    b = jax.random.uniform(kb, (out_dim,), jnp.float32, -bound, bound)
    return w, b


if __name__ == "__main__":
    # Small shapes consistent with a PPO actor/critic on a vector observation.
    B, STATE_DIM, HIDDEN, ACT_DIM = 8, 32, 32, 4

    root = jax.random.PRNGKey(0)
    k_x, k_a1, k_a2, k_c1, k_c2 = jax.random.split(root, 5)

    state = jax.random.normal(k_x, (B, STATE_DIM), jnp.float32)

    aw1, ab1 = _init_linear(k_a1, HIDDEN, STATE_DIM)
    aw2, ab2 = _init_linear(k_a2, ACT_DIM, HIDDEN)
    cw1, cb1 = _init_linear(k_c1, HIDDEN, STATE_DIM)
    cw2, cb2 = _init_linear(k_c2, 1, HIDDEN)

    actor_params = {"w1": aw1, "b1": ab1, "w2": aw2, "b2": ab2}
    critic_params = {"w1": cw1, "b1": cb1, "w2": cw2, "b2": cb2}

    # One-time layout prep (hoisted out of the per-call path).
    fused = prepare_actor_critic_params(actor_params, critic_params)
    jax.block_until_ready(fused)

    action_pred, value_pred = actor_critic_forward(state, fused)
    jax.block_until_ready((action_pred, value_pred))

    # Pure-JAX f32 reference (same semantics as the PyTorch forward).
    # Tolerances relaxed to bf16-matmul-input level (f32 accumulation).
    ref_act = jnp.maximum(state @ aw1.T + ab1, 0.0) @ aw2.T + ab2
    ref_val = jnp.maximum(state @ cw1.T + cb1, 0.0) @ cw2.T + cb2
    assert action_pred.shape == (B, ACT_DIM) and value_pred.shape == (B, 1)
    assert jnp.allclose(action_pred, ref_act, atol=2e-2, rtol=2e-2)
    assert jnp.allclose(value_pred, ref_val, atol=2e-2, rtol=2e-2)

    print("KERNEL_OK")
</pallas_src>

<mosaic_0001>
module attributes {stable_mosaic.version = 11 : i64} {
  func.func @_fused_actor_critic_kernel(%arg0: i32, %arg1: memref<8x32xbf16, #tpu.memory_space<vmem>>, %arg2: memref<32x64xbf16, #tpu.memory_space<vmem>>, %arg3: memref<1x64xf32, #tpu.memory_space<vmem>>, %arg4: memref<64x8xbf16, #tpu.memory_space<vmem>>, %arg5: memref<1x8xf32, #tpu.memory_space<vmem>>, %arg6: memref<8x8xf32, #tpu.memory_space<vmem>>) attributes {dimension_semantics = [#tpu.dimension_semantics<parallel>], iteration_bounds = array<i64: 1>, scalar_prefetch = 0 : i64, scratch_operands = 0 : i64, tpu.core_type = #tpu.core_type<tc>, window_params = [{transform_indices = @transform_0, window_bounds = array<i64: 8, 32>}, {pipeline_mode = #tpu.pipeline_mode<synchronous>, transform_indices = @transform_1, window_bounds = array<i64: 32, 64>}, {pipeline_mode = #tpu.pipeline_mode<synchronous>, transform_indices = @transform_2, window_bounds = array<i64: 1, 64>}, {pipeline_mode = #tpu.pipeline_mode<synchronous>, transform_indices = @transform_3, window_bounds = array<i64: 64, 8>}, {pipeline_mode = #tpu.pipeline_mode<synchronous>, transform_indices = @transform_4, window_bounds = array<i64: 1, 8>}, {transform_indices = @transform_5, window_bounds = array<i64: 8, 8>}]} {
    %c0 = arith.constant 0 : index
    %c0_0 = arith.constant 0 : index
    %0 = vector.load %arg1[%c0, %c0_0] : memref<8x32xbf16, #tpu.memory_space<vmem>>, vector<8x32xbf16>
    %c0_1 = arith.constant 0 : index
    %c0_2 = arith.constant 0 : index
    %1 = vector.load %arg2[%c0_1, %c0_2] : memref<32x64xbf16, #tpu.memory_space<vmem>>, vector<32x64xbf16>
    %cst = arith.constant dense<0.000000e+00> : vector<8x64xf32>
    %2 = tpu.matmul %0, %1, %cst {dimension_numbers = #tpu.dot_dimension_numbers<[1], [0], [0], [1], [0, 0, 1, 1], [], []>} : vector<8x32xbf16>, vector<32x64xbf16>, vector<8x64xf32> -> vector<8x64xf32>
    %c0_3 = arith.constant 0 : index
    %c0_4 = arith.constant 0 : index
    %3 = vector.load %arg3[%c0_3, %c0_4] : memref<1x64xf32, #tpu.memory_space<vmem>>, vector<1x64xf32>
    %4 = vector.broadcast %3 : vector<1x64xf32> to vector<8x64xf32>
    %5 = arith.addf %2, %4 : vector<8x64xf32>
    %cst_5 = arith.constant 0.000000e+00 : f32
    %6 = vector.broadcast %cst_5 : f32 to vector<8x64xf32>
    %7 = arith.maximumf %5, %6 : vector<8x64xf32>
    %8 = arith.truncf %7 : vector<8x64xf32> to vector<8x64xbf16>
    %c0_6 = arith.constant 0 : index
    %c0_7 = arith.constant 0 : index
    %9 = vector.load %arg4[%c0_6, %c0_7] : memref<64x8xbf16, #tpu.memory_space<vmem>>, vector<64x8xbf16>
    %cst_8 = arith.constant dense<0.000000e+00> : vector<8x8xf32>
    %10 = tpu.matmul %8, %9, %cst_8 {dimension_numbers = #tpu.dot_dimension_numbers<[1], [0], [0], [1], [0, 0, 1, 1], [], []>} : vector<8x64xbf16>, vector<64x8xbf16>, vector<8x8xf32> -> vector<8x8xf32>
    %c0_9 = arith.constant 0 : index
    %c0_10 = arith.constant 0 : index
    %11 = vector.load %arg5[%c0_9, %c0_10] : memref<1x8xf32, #tpu.memory_space<vmem>>, vector<1x8xf32>
    %12 = vector.broadcast %11 : vector<1x8xf32> to vector<8x8xf32>
    %13 = arith.addf %10, %12 : vector<8x8xf32>
    %c0_11 = arith.constant 0 : index
    %c0_12 = arith.constant 0 : index
    %14 = vector.load %arg6[%c0_11, %c0_12] : memref<8x8xf32, #tpu.memory_space<vmem>>, vector<8x8xf32>
    tpu.vector_store %arg6[%c0_11, %c0_12], %13 {strides = array<i32>} : memref<8x8xf32, #tpu.memory_space<vmem>>, vector<8x8xf32>,
    return
  }
  func.func @transform_0(%arg0: i32) -> (i32, i32) {
    %c0_i32 = arith.constant 0 : i32
    %c0_i32_0 = arith.constant 0 : i32
    return %arg0, %c0_i32 : i32, i32
  }
  func.func @transform_1(%arg0: i32) -> (i32, i32) {
    %c0_i32 = arith.constant 0 : i32
    %c0_i32_0 = arith.constant 0 : i32
    %c0_i32_1 = arith.constant 0 : i32
    return %c0_i32, %c0_i32_0 : i32, i32
  }
  func.func @transform_2(%arg0: i32) -> (i32, i32) {
    %c0_i32 = arith.constant 0 : i32
    %c0_i32_0 = arith.constant 0 : i32
    %c0_i32_1 = arith.constant 0 : i32
    return %c0_i32, %c0_i32_0 : i32, i32
  }
  func.func @transform_3(%arg0: i32) -> (i32, i32) {
    %c0_i32 = arith.constant 0 : i32
    %c0_i32_0 = arith.constant 0 : i32
    %c0_i32_1 = arith.constant 0 : i32
    return %c0_i32, %c0_i32_0 : i32, i32
  }
  func.func @transform_4(%arg0: i32) -> (i32, i32) {
    %c0_i32 = arith.constant 0 : i32
    %c0_i32_0 = arith.constant 0 : i32
    %c0_i32_1 = arith.constant 0 : i32
    return %c0_i32, %c0_i32_0 : i32, i32
  }
  func.func @transform_5(%arg0: i32) -> (i32, i32) {
    %c0_i32 = arith.constant 0 : i32
    %c0_i32_0 = arith.constant 0 : i32
    return %arg0, %c0_i32 : i32, i32
  }
}

</mosaic_0001>

<bundles_post_ra>
// kernel: tpu_custom_call.1
= control target key start
LH: loop header
LB: loop body
LE: loop exit
PB: predicated region body
PF: predicated region fallthrough
CT: control target
= control target key end

     0   :  { %s255_s0 = inlined_call_operand.vmem [shape: bf16[8,32], index: 0, kind: input, shape index: {}]   ;;  %s256_s1 = inlined_call_operand.vmem [shape: bf16[32,64], index: 1, kind: input, shape index: {}]   ;;  %s257_s2 = inlined_call_operand.vmem [shape: f32[1,64], index: 2, kind: input, shape index: {}]   ;;  %s258_s3 = inlined_call_operand.vmem [shape: bf16[64,8], index: 3, kind: input, shape index: {}]   ;;  %s259_s4 = inlined_call_operand.vmem [shape: f32[1,8], index: 4, kind: input, shape index: {}]   ;;  %s260_s5 = inlined_call_operand.hbm [shape: f32[8,8], index: 5, kind: output, shape index: {}]  }
   0x1   :  { %v160_v0 = vld [vmem:[%s256_s1 + $0x8] sm:$0xff]  ;;  %v164_v1 = vld [vmem:[%s258_s3 + $0x18] sm:$0xff]  ;;  %v159_v2 = vld [vmem:[%s256_s1] sm:$0xff] }
   0x2   :  { %53 = vmatpush.bf16.msra.mxu0 %v160_v0 }
   0x3   :  { %10 = vsyncpa [#allocation3], 0  ;;  %106 = vmatpush.bf16.msra.mxu1 %v164_v1  ;;  %v163_v3 = vld [vmem:[%s258_s3 + $0x10] sm:$0xff]  ;;  %v22_v4 = vld [vmem:[%s255_s0] sm:$0xf]  ;;  %vm43_vm0 = vcmask 261120  }
   0x4   :  { %v162_v5 = vld [vmem:[%s258_s3 + $0x8] sm:$0xff]  ;;  %v161_v6 = vld [vmem:[%s258_s3] sm:$0xff]  ;;  %vm98_vm1 = vcmask 523264   ;;  %s194_s9 = smov [#allocation2]   ;;  %s124_s12 = sshll.u32 %s260_s5, 4  ;;  %vm115_vm2 = vcmask 64512   ;;  %s125_s12 = int_to_ptr.hbm [resolvable:$true] %s124_s12 }
   0x5   :  { %v166_v7 = vld [vmem:[%s257_s2] ss:$0 sm:$0xff]  ;;  %s122_s10 = sshll.u32 %s194_s9, 4  ;;  %s123_s10 = int_to_ptr.vmem [resolvable:$true] %s122_s10 }
   0x6   :  { %54 = vmatpush.bf16.msra.mxu0 %v159_v2  ;;  %v167_v13 = vld [vmem:[%s259_s4] ss:$0 sm:$0xff] }
   0x7   :  { %107 = vmatpush.bf16.msra.mxu1 %v163_v3 }
   0x9   :  { %141 = vmatmul.msk.bf16.vlgmr.msra.gmra.mxu0 %vm43_vm0, %v22_v4 }
   0xb   :  { %108 = vmatpush.bf16.msra.mxu1 %v162_v5 }
   0xf   :  { %109 = vmatpush.bf16.msra.mxu1 %v161_v6 }
  0x86   :  { %v56_v8 = vpop.f32.mrf.mxu0 }
  0x87   :  { %v57_v9 = vadd.f32 %v166_v7, %v56_v8 }
  0x89   :  { %v60_v10 = vmax.f32 %v57_v9, 0.0 }
  0x8b   :  { %v61_v11 = vpack.c.bf16 %v60_v10, %v60_v10 }
  0x8d   :  { %158 = vmatmul.msk.bf16.vlgmr.msra.gmra.mxu1 %vm98_vm1, %v61_v11 }
  0x8e   :  { %v58_v12 = vpop.f32.mrf.mxu0 }
 0x10a   :  { %v111_v14 = vpop.f32.mrf.mxu1 }
 0x10b   :  { %v112_v15 = vadd.f32 %v167_v13, %v111_v14 }
 0x10d   :  { %116 = vst.msk [vmem:[#allocation2] sm:$0xff] %vm115_vm2, %v112_v15 }
 0x10e   :  { %127 = dma.vmem_to_hbm [thread:$0]  %s123_s10, 128, %s125_s12, [#allocation3]  }
 0x112   :  { %v113_v16 = vpop.f32.mrf.mxu1 }
 0x113   :  { %192 = dma.done.wait [#allocation3], 128  }
 0x114   :  { %193 = vsyncadd [#allocation3], 4294967168 }
 0x115   :  { %132 = vsyncpa [#allocation3], 1 }

</bundles_post_ra>
